<compile_context>
chip_gen: v6e
topology: v6e:2x2x1
jax: 0.10.0
libtpu: 0.0.40
codegen_flags: <defaults>
</compile_context>

<pallas_src>
import functools

import jax
import jax.numpy as jnp
from jax.experimental import pallas as pl
from jax.experimental.pallas import tpu as pltpu

IN_DIM = 28 * 28          # 784
H1 = 512
H2 = 256
NEG_SLOPE = 0.01          # nn.LeakyReLU() default


def _cdiv(a, b):
    return -(-a // b)


def _round_up(n, m):
    return ((n + m - 1) // m) * m


def _num_parallel_cores():
    """TensorCores that a 'parallel' grid dim shards across (v4/v5p/v7x: 2)."""
    try:
        kind = jax.devices()[0].device_kind.lower()
    except Exception:
        return 1
    return 2 if any(t in kind for t in ("v4", "v5p", "v7")) else 1


def _disc_kernel(x_ref, w1_ref, b1_ref, w2_ref, b2_ref, w3_ref, b3_ref, o_ref):
    # Layer 1: Linear(784 -> 512) + LeakyReLU(0.01).  f32 x is cast to bf16 in
    # VMEM (VPU slot, overlaps MXU); matmuls accumulate in f32.
    x = x_ref[...].astype(jnp.bfloat16)                                  # [bm, 784]
    h1 = jnp.dot(x, w1_ref[...], preferred_element_type=jnp.float32)    # [bm, 512]
    h1 = h1 + b1_ref[...]
    h1 = jnp.where(h1 > 0, h1, NEG_SLOPE * h1)

    # Layer 2: Linear(512 -> 256) + LeakyReLU(0.01).
    h2 = jnp.dot(h1.astype(jnp.bfloat16), w2_ref[...],
                 preferred_element_type=jnp.float32)                    # [bm, 256]
    h2 = h2 + b2_ref[...]
    h2 = jnp.where(h2 > 0, h2, NEG_SLOPE * h2)

    # Layer 3: Linear(256 -> 1) as a VPU multiply + lane reduce (an N=1 MXU
    # matmul would waste the systolic array), then Sigmoid.  The result is
    # written lane-dense as a (1, 1, bm) row.
    w3_row = w3_ref[...].astype(jnp.float32)                            # [1, 256]
    dots = jnp.sum(h2 * w3_row, axis=-1)                                # [bm]
    logit = dots.reshape(1, 1, -1) + b3_ref[...].reshape(1, 1, 1)       # [1, 1, bm]
    o_ref[...] = jax.nn.sigmoid(logit)


@functools.partial(jax.jit, static_argnames=("block_b",))
def discriminator_forward(x, params, block_b=1024):
    """x: anything flattening to [-1, 784] (e.g. NCHW [B,1,28,28]). Returns [B,1] f32."""
    w1, b1, w2, b2, w3, b3 = params

    # x.view(-1, 784); consumed by the kernel as-is (f32, unpadded minor dim).
    x2d = x.reshape(-1, IN_DIM).astype(jnp.float32)
    batch = x2d.shape[0]
    if batch == 0:
        return jnp.zeros((0, 1), jnp.float32)

    # Split the batch evenly over the needed steps (waste <= 7 rows per step).
    n_cores = _num_parallel_cores()
    n_steps = max(1, _cdiv(batch, block_b))
    if n_cores > 1 and batch >= 8 * n_cores:
        n_steps = max(n_steps, n_cores)
        n_steps = _cdiv(n_steps, n_cores) * n_cores   # balance across TensorCores
    bm = _round_up(_cdiv(batch, n_steps), 8)
    b_pad = n_steps * bm
    if b_pad != batch:
        x2d = jnp.pad(x2d, ((0, b_pad - batch), (0, 0)))

    # Weights in bf16 (kernel is weight/activation-DMA light); biases f32.
    w1b = w1.astype(jnp.bfloat16)                       # [784, 512]
    w2b = w2.astype(jnp.bfloat16)                       # [512, 256]
    w3row = w3.reshape(1, H2).astype(jnp.bfloat16)      # [1, 256]
    b1f = b1.reshape(1, H1).astype(jnp.float32)
    b2f = b2.reshape(1, H2).astype(jnp.float32)
    b3f = b3.reshape(1, 1).astype(jnp.float32)

    const = lambda i: (0, 0)   # weights/biases stay VMEM-resident across steps

    flops = 2 * b_pad * (IN_DIM * H1 + H1 * H2 + H2)
    bytes_accessed = (x2d.size * 4 + w1b.size * 2 + w2b.size * 2 + w3row.size * 2
                      + (H1 + H2 + 1) * 4 + b_pad * 4)

    out = pl.pallas_call(
        _disc_kernel,
        out_shape=jax.ShapeDtypeStruct((n_steps, 1, bm), jnp.float32),
        grid=(n_steps,),
        in_specs=[
            pl.BlockSpec((bm, IN_DIM), lambda i: (i, 0)),   # x tile: pipelined
            pl.BlockSpec((IN_DIM, H1), const),              # w1
            pl.BlockSpec((1, H1), const),                   # b1
            pl.BlockSpec((H1, H2), const),                  # w2
            pl.BlockSpec((1, H2), const),                   # b2
            pl.BlockSpec((1, H2), const),                   # w3 (as row)
            pl.BlockSpec((1, 1), const),                    # b3
        ],
        out_specs=pl.BlockSpec((1, 1, bm), lambda i: (i, 0, 0)),   # lane-dense rows
        compiler_params=pltpu.CompilerParams(
            dimension_semantics=("parallel",),
            vmem_limit_bytes=32 * 1024 * 1024),
        cost_estimate=pl.CostEstimate(
            flops=flops, transcendentals=b_pad, bytes_accessed=bytes_accessed),
    )(x2d, w1b, b1f, w2b, b2f, w3row, b3f)

    return out.reshape(-1, 1)[:batch]


def init_params(key):
    """Deterministic init mimicking PyTorch Linear's U(-1/sqrt(fan_in), 1/sqrt(fan_in)).

    Weights stored as [in_features, out_features] (transposed vs. PyTorch), so the
    kernel computes y = x @ W + b. Biases stored as [1, out_features].
    """
    dims = [(IN_DIM, H1), (H1, H2), (H2, 1)]
    params = []
    for i, (fan_in, fan_out) in enumerate(dims):
        kw, kb = jax.random.split(jax.random.fold_in(key, i))
        bound = 1.0 / (fan_in ** 0.5)
        w = jax.random.uniform(kw, (fan_in, fan_out), jnp.float32, -bound, bound)
        b = jax.random.uniform(kb, (1, fan_out), jnp.float32, -bound, bound)
        params.extend([w, b])
    return tuple(params)


def _reference_forward(x, params):
    """Plain-JAX f32 reference for numerical sanity check."""
    w1, b1, w2, b2, w3, b3 = params
    h = x.reshape(-1, IN_DIM).astype(jnp.float32)
    h = h @ w1 + b1
    h = jnp.where(h > 0, h, NEG_SLOPE * h)
    h = h @ w2 + b2
    h = jnp.where(h > 0, h, NEG_SLOPE * h)
    h = h @ w3 + b3.reshape(1, 1)
    return jax.nn.sigmoid(h)


if __name__ == "__main__":
    key = jax.random.PRNGKey(0)
    k_params, k_x1, k_x2 = jax.random.split(key, 3)

    params = init_params(k_params)

    # Small MNIST-like batch: NCHW [B=8, C=1, H=28, W=28] (single grid step).
    x_small = jax.random.normal(k_x1, (8, 1, 28, 28), dtype=jnp.float32)
    out_small = jax.block_until_ready(discriminator_forward(x_small, params))
    ref_small = _reference_forward(x_small, params)
    assert out_small.shape == (8, 1), out_small.shape
    # bf16 matmuls with f32 accumulation -> relaxed tolerance on the sigmoid output.
    assert jnp.allclose(out_small, ref_small, atol=3e-2), "small-batch mismatch"

    # Ragged batch (300 rows) to exercise the even-split batch padding path.
    x_big = jax.random.normal(k_x2, (300, 1, 28, 28), dtype=jnp.float32)
    out_big = jax.block_until_ready(discriminator_forward(x_big, params))
    ref_big = _reference_forward(x_big, params)
    assert out_big.shape == (300, 1), out_big.shape
    assert jnp.allclose(out_big, ref_big, atol=3e-2), "large-batch mismatch"

    # Force a multi-step grid (small block) to exercise pipelining + lane-dense out.
    out_multi = jax.block_until_ready(
        discriminator_forward(x_big, params, block_b=128))
    assert out_multi.shape == (300, 1), out_multi.shape
    assert jnp.allclose(out_multi, ref_big, atol=3e-2), "multi-step mismatch"

    print("KERNEL_OK")
</pallas_src>

<mosaic_0001>
module attributes {stable_mosaic.version = 11 : i64} {
  func.func @_disc_kernel(%arg0: i32, %arg1: memref<8x784xf32, #tpu.memory_space<vmem>>, %arg2: memref<784x512xbf16, #tpu.memory_space<vmem>>, %arg3: memref<1x512xf32, #tpu.memory_space<vmem>>, %arg4: memref<512x256xbf16, #tpu.memory_space<vmem>>, %arg5: memref<1x256xf32, #tpu.memory_space<vmem>>, %arg6: memref<1x256xbf16, #tpu.memory_space<vmem>>, %arg7: memref<1x1xf32, #tpu.memory_space<vmem>>, %arg8: memref<1x1x8xf32, #tpu.memory_space<vmem>>) attributes {dimension_semantics = [#tpu.dimension_semantics<parallel>], iteration_bounds = array<i64: 1>, scalar_prefetch = 0 : i64, scratch_operands = 0 : i64, tpu.core_type = #tpu.core_type<tc>, window_params = [{transform_indices = @transform_0, window_bounds = array<i64: 8, 784>}, {pipeline_mode = #tpu.pipeline_mode<synchronous>, transform_indices = @transform_1, window_bounds = array<i64: 784, 512>}, {pipeline_mode = #tpu.pipeline_mode<synchronous>, transform_indices = @transform_2, window_bounds = array<i64: 1, 512>}, {pipeline_mode = #tpu.pipeline_mode<synchronous>, transform_indices = @transform_3, window_bounds = array<i64: 512, 256>}, {pipeline_mode = #tpu.pipeline_mode<synchronous>, transform_indices = @transform_4, window_bounds = array<i64: 1, 256>}, {pipeline_mode = #tpu.pipeline_mode<synchronous>, transform_indices = @transform_5, window_bounds = array<i64: 1, 256>}, {pipeline_mode = #tpu.pipeline_mode<synchronous>, transform_indices = @transform_6, window_bounds = array<i64: 1, 1>}, {transform_indices = @transform_7, window_bounds = array<i64: 1, 1, 8>}]} {
    %c0 = arith.constant 0 : index
    %c0_0 = arith.constant 0 : index
    %0 = vector.load %arg1[%c0, %c0_0] : memref<8x784xf32, #tpu.memory_space<vmem>>, vector<8x784xf32>
    %1 = arith.truncf %0 : vector<8x784xf32> to vector<8x784xbf16>
    %c0_1 = arith.constant 0 : index
    %c0_2 = arith.constant 0 : index
    %2 = vector.load %arg2[%c0_1, %c0_2] : memref<784x512xbf16, #tpu.memory_space<vmem>>, vector<784x512xbf16>
    %cst = arith.constant dense<0.000000e+00> : vector<8x512xf32>
    %3 = tpu.matmul %1, %2, %cst {dimension_numbers = #tpu.dot_dimension_numbers<[1], [0], [0], [1], [0, 0, 1, 1], [], []>} : vector<8x784xbf16>, vector<784x512xbf16>, vector<8x512xf32> -> vector<8x512xf32>
    %c0_3 = arith.constant 0 : index
    %c0_4 = arith.constant 0 : index
    %4 = vector.load %arg3[%c0_3, %c0_4] : memref<1x512xf32, #tpu.memory_space<vmem>>, vector<1x512xf32>
    %5 = vector.broadcast %4 : vector<1x512xf32> to vector<8x512xf32>
    %6 = arith.addf %3, %5 : vector<8x512xf32>
    %cst_5 = arith.constant 0.000000e+00 : f32
    %7 = vector.broadcast %cst_5 : f32 to vector<8x512xf32>
    %8 = arith.cmpf ogt, %6, %7 : vector<8x512xf32>
    %cst_6 = arith.constant 0.00999999977 : f32
    %9 = vector.broadcast %cst_6 : f32 to vector<8x512xf32>
    %10 = arith.mulf %9, %6 : vector<8x512xf32>
    %11 = arith.select %8, %6, %10 : vector<8x512xi1>, vector<8x512xf32>
    %12 = arith.truncf %11 : vector<8x512xf32> to vector<8x512xbf16>
    %c0_7 = arith.constant 0 : index
    %c0_8 = arith.constant 0 : index
    %13 = vector.load %arg4[%c0_7, %c0_8] : memref<512x256xbf16, #tpu.memory_space<vmem>>, vector<512x256xbf16>
    %cst_9 = arith.constant dense<0.000000e+00> : vector<8x256xf32>
    %14 = tpu.matmul %12, %13, %cst_9 {dimension_numbers = #tpu.dot_dimension_numbers<[1], [0], [0], [1], [0, 0, 1, 1], [], []>} : vector<8x512xbf16>, vector<512x256xbf16>, vector<8x256xf32> -> vector<8x256xf32>
    %c0_10 = arith.constant 0 : index
    %c0_11 = arith.constant 0 : index
    %15 = vector.load %arg5[%c0_10, %c0_11] : memref<1x256xf32, #tpu.memory_space<vmem>>, vector<1x256xf32>
    %16 = vector.broadcast %15 : vector<1x256xf32> to vector<8x256xf32>
    %17 = arith.addf %14, %16 : vector<8x256xf32>
    %cst_12 = arith.constant 0.000000e+00 : f32
    %18 = vector.broadcast %cst_12 : f32 to vector<8x256xf32>
    %19 = arith.cmpf ogt, %17, %18 : vector<8x256xf32>
    %cst_13 = arith.constant 0.00999999977 : f32
    %20 = vector.broadcast %cst_13 : f32 to vector<8x256xf32>
    %21 = arith.mulf %20, %17 : vector<8x256xf32>
    %22 = arith.select %19, %17, %21 : vector<8x256xi1>, vector<8x256xf32>
    %c0_14 = arith.constant 0 : index
    %c0_15 = arith.constant 0 : index
    %23 = vector.load %arg6[%c0_14, %c0_15] : memref<1x256xbf16, #tpu.memory_space<vmem>>, vector<1x256xbf16>
    %24 = arith.extf %23 : vector<1x256xbf16> to vector<1x256xf32>
    %25 = vector.broadcast %24 : vector<1x256xf32> to vector<8x256xf32>
    %26 = arith.mulf %22, %25 : vector<8x256xf32>
    %cst_16 = arith.constant dense<0.000000e+00> : vector<8xf32>
    %27 = vector.multi_reduction <add>, %26, %cst_16 [1] : vector<8x256xf32> to vector<8xf32>
    %28 = vector.shape_cast %27 : vector<8xf32> to vector<1x1x8xf32>
    %c0_17 = arith.constant 0 : index
    %c0_18 = arith.constant 0 : index
    %29 = vector.load %arg7[%c0_17, %c0_18] : memref<1x1xf32, #tpu.memory_space<vmem>>, vector<1x1xf32>
    %30 = vector.shape_cast %29 : vector<1x1xf32> to vector<1x1x1xf32>
    %31 = vector.broadcast %30 : vector<1x1x1xf32> to vector<1x1x8xf32>
    %32 = arith.addf %28, %31 : vector<1x1x8xf32>
    %33 = arith.negf %32 : vector<1x1x8xf32>
    %34 = math.exp %33 : vector<1x1x8xf32>
    %cst_19 = arith.constant 1.000000e+00 : f32
    %35 = vector.broadcast %cst_19 : f32 to vector<1x1x8xf32>
    %36 = arith.addf %35, %34 : vector<1x1x8xf32>
    %37 = arith.divf %35, %36 : vector<1x1x8xf32>
    %c0_20 = arith.constant 0 : index
    %c0_21 = arith.constant 0 : index
    %c0_22 = arith.constant 0 : index
    %38 = vector.load %arg8[%c0_20, %c0_21, %c0_22] : memref<1x1x8xf32, #tpu.memory_space<vmem>>, vector<1x1x8xf32>
    tpu.vector_store %arg8[%c0_20, %c0_21, %c0_22], %37 {strides = array<i32>} : memref<1x1x8xf32, #tpu.memory_space<vmem>>, vector<1x1x8xf32>,
    return
  }
  func.func @transform_0(%arg0: i32) -> (i32, i32) {
    %c0_i32 = arith.constant 0 : i32
    %c0_i32_0 = arith.constant 0 : i32
    return %arg0, %c0_i32 : i32, i32
  }
  func.func @transform_1(%arg0: i32) -> (i32, i32) {
    %c0_i32 = arith.constant 0 : i32
    %c0_i32_0 = arith.constant 0 : i32
    %c0_i32_1 = arith.constant 0 : i32
    return %c0_i32, %c0_i32_0 : i32, i32
  }
  func.func @transform_2(%arg0: i32) -> (i32, i32) {
    %c0_i32 = arith.constant 0 : i32
    %c0_i32_0 = arith.constant 0 : i32
    %c0_i32_1 = arith.constant 0 : i32
    return %c0_i32, %c0_i32_0 : i32, i32
  }
  func.func @transform_3(%arg0: i32) -> (i32, i32) {
    %c0_i32 = arith.constant 0 : i32
    %c0_i32_0 = arith.constant 0 : i32
    %c0_i32_1 = arith.constant 0 : i32
    return %c0_i32, %c0_i32_0 : i32, i32
  }
  func.func @transform_4(%arg0: i32) -> (i32, i32) {
    %c0_i32 = arith.constant 0 : i32
    %c0_i32_0 = arith.constant 0 : i32
    %c0_i32_1 = arith.constant 0 : i32
    return %c0_i32, %c0_i32_0 : i32, i32
  }
  func.func @transform_5(%arg0: i32) -> (i32, i32) {
    %c0_i32 = arith.constant 0 : i32
    %c0_i32_0 = arith.constant 0 : i32
    %c0_i32_1 = arith.constant 0 : i32
    return %c0_i32, %c0_i32_0 : i32, i32
  }
  func.func @transform_6(%arg0: i32) -> (i32, i32) {
    %c0_i32 = arith.constant 0 : i32
    %c0_i32_0 = arith.constant 0 : i32
    %c0_i32_1 = arith.constant 0 : i32
    return %c0_i32, %c0_i32_0 : i32, i32
  }
  func.func @transform_7(%arg0: i32) -> (i32, i32, i32) {
    %c0_i32 = arith.constant 0 : i32
    %c0_i32_0 = arith.constant 0 : i32
    %c0_i32_1 = arith.constant 0 : i32
    return %arg0, %c0_i32, %c0_i32_0 : i32, i32, i32
  }
}

</mosaic_0001>

<bundles_post_ra>
// kernel: discriminator_forward.1
= control target key start
LH: loop header
LB: loop body
LE: loop exit
PB: predicated region body
PF: predicated region fallthrough
CT: control target
= control target key end

     0   :  { %s3735_s0 = inlined_call_operand.vmem [shape: f32[8,784], index: 0, kind: input, shape index: {}]   ;;  %s3736_s1 = inlined_call_operand.vmem [shape: bf16[784,512], index: 1, kind: input, shape index: {}]   ;;  %s3737_s2 = inlined_call_operand.vmem [shape: f32[1,512], index: 2, kind: input, shape index: {}]   ;;  %s3738_s3 = inlined_call_operand.vmem [shape: bf16[512,256], index: 3, kind: input, shape index: {}]   ;;  %s3739_s4 = inlined_call_operand.vmem [shape: f32[1,256], index: 4, kind: input, shape index: {}]   ;;  %s3740_s5 = inlined_call_operand.vmem [shape: bf16[1,256], index: 5, kind: input, shape index: {}]   ;;  %s3741_s6 = inlined_call_operand.<no memory space> [shape: f32[1,1], index: 6, kind: input, shape index: {}]   ;;  %s3742_s7 = inlined_call_operand.hbm [shape: f32[1,1,8], index: 7, kind: output, shape index: {}]  }
   0x1   :  { %v12_v0 = vstv %s3741_s6 }
   0x2   :  { %13 = vst [vmem:[#allocation2] sm:$0x1] %v12_v0 }
   0x3   :  { %v2407_v1 = vld [vmem:[%s3736_s1 + $0xe4] ss:$16 sps:$4 sm:$0xff]   ;;  %v2823_v3 = vmov 0   ;;  %v2411_v4 = vld [vmem:[%s3736_s1 + $0xe0] ss:$16 sps:$4 sm:$0xff]   ;;  %v31_v48 = vld [vmem:[%s3735_s0 + $0x8] sm:$0xff] }
   0x4   :  { %v2409_v2 = vld [vmem:[%s3736_s1 + $0x2e4] ss:$16 sps:$4 sm:$0xff]   ;;  %2406 = vset.pattern.permute.xlu0 %v2823_v3  ;;  %1246 = vmatprep.subr.bf16.mxu0 %v2407_v1  ;;  %v2412_v5 = vld [vmem:[%s3736_s1 + $0x2e0] ss:$16 sps:$4 sm:$0xff]   ;;  %v3016_v51 = vpack.c.bf16 %v31_v48, %v31_v48  ;;  %v33_v52 = vld [vmem:[%s3735_s0 + $0x18] sm:$0xff]  ;;  %vm1242_vm0 = vcmask 130048  }
   0x5   :  { %1287 = vmatprep.subr.bf16.mxu1 %v2409_v2  ;;  %v2413_v6 = vld [vmem:[%s3736_s1 + $0xc4] ss:$16 sps:$4 sm:$0xff]   ;;  %1247 = vmatpush1.bf16.msra.mxu0 %v2411_v4  ;;  %v2417_v8 = vld [vmem:[%s3736_s1 + $0xc0] ss:$16 sps:$4 sm:$0xff]   ;;  %v3024_v54 = vpack.c.bf16 %v33_v52, %v33_v52 }
   0x6   :  { %1288 = vmatpush1.bf16.msra.mxu1 %v2412_v5  ;;  %v2415_v7 = vld [vmem:[%s3736_s1 + $0x2c4] ss:$16 sps:$4 sm:$0xff]   ;;  %1248 = vmatprep.subr.bf16.mxu0 %v2413_v6  ;;  %v2418_v9 = vld [vmem:[%s3736_s1 + $0x2c0] ss:$16 sps:$4 sm:$0xff]  }
   0x7   :  { %1289 = vmatprep.subr.bf16.mxu1 %v2415_v7  ;;  %v2419_v10 = vld [vmem:[%s3736_s1 + $0xa4] ss:$16 sps:$4 sm:$0xff]   ;;  %v2423_v12 = vld [vmem:[%s3736_s1 + $0xa0] ss:$16 sps:$4 sm:$0xff]   ;;  %1278 = vmatprep.mubr.bf16.mxu0 %v3016_v51 }
   0x8   :  { %v2421_v11 = vld [vmem:[%s3736_s1 + $0x2a4] ss:$16 sps:$4 sm:$0xff]   ;;  %v2424_v13 = vld [vmem:[%s3736_s1 + $0x2a0] ss:$16 sps:$4 sm:$0xff]   ;;  %1319 = vmatprep.mubr.bf16.mxu1 %v3024_v54 }
   0x9   :  { %1249 = vmatpush1.bf16.msra.mxu0 %v2417_v8  ;;  %v2425_v14 = vld [vmem:[%s3736_s1 + $0x84] ss:$16 sps:$4 sm:$0xff]   ;;  %v2429_v16 = vld [vmem:[%s3736_s1 + $0x80] ss:$16 sps:$4 sm:$0xff]  }
   0xa   :  { %1290 = vmatpush1.bf16.msra.mxu1 %v2418_v9  ;;  %1250 = vmatprep.subr.bf16.mxu0 %v2419_v10  ;;  %v2427_v15 = vld [vmem:[%s3736_s1 + $0x284] ss:$16 sps:$4 sm:$0xff]   ;;  %v2430_v17 = vld [vmem:[%s3736_s1 + $0x280] ss:$16 sps:$4 sm:$0xff]  }
   0xb   :  { %1291 = vmatprep.subr.bf16.mxu1 %v2421_v11  ;;  %v2431_v18 = vld [vmem:[%s3736_s1 + $0x64] ss:$16 sps:$4 sm:$0xff]   ;;  %v2435_v20 = vld [vmem:[%s3736_s1 + $0x60] ss:$16 sps:$4 sm:$0xff]  }
   0xc   :  { %v2433_v19 = vld [vmem:[%s3736_s1 + $0x264] ss:$16 sps:$4 sm:$0xff]   ;;  %v2436_v21 = vld [vmem:[%s3736_s1 + $0x260] ss:$16 sps:$4 sm:$0xff]  }
   0xd   :  { %1251 = vmatpush1.bf16.msra.mxu0 %v2423_v12  ;;  %v2437_v22 = vld [vmem:[%s3736_s1 + $0x44] ss:$16 sps:$4 sm:$0xff]   ;;  %v2441_v24 = vld [vmem:[%s3736_s1 + $0x40] ss:$16 sps:$4 sm:$0xff]  }
   0xe   :  { %1292 = vmatpush1.bf16.msra.mxu1 %v2424_v13  ;;  %1252 = vmatprep.subr.bf16.mxu0 %v2425_v14  ;;  %v2439_v23 = vld [vmem:[%s3736_s1 + $0x244] ss:$16 sps:$4 sm:$0xff]   ;;  %v2442_v25 = vld [vmem:[%s3736_s1 + $0x240] ss:$16 sps:$4 sm:$0xff]  }
   0xf   :  { %1293 = vmatprep.subr.bf16.mxu1 %v2427_v15  ;;  %v2443_v26 = vld [vmem:[%s3736_s1 + $0x24] ss:$16 sps:$4 sm:$0xff]   ;;  %v2447_v28 = vld [vmem:[%s3736_s1 + $0x20] ss:$16 sps:$4 sm:$0xff]  }
  0x10   :  { %v2445_v27 = vld [vmem:[%s3736_s1 + $0x224] ss:$16 sps:$4 sm:$0xff]   ;;  %v2448_v29 = vld [vmem:[%s3736_s1 + $0x220] ss:$16 sps:$4 sm:$0xff]  }
  0x11   :  { %1253 = vmatpush1.bf16.msra.mxu0 %v2429_v16  ;;  %v2449_v30 = vld [vmem:[%s3736_s1 + $0x4] ss:$16 sps:$4 sm:$0xff]   ;;  %v2453_v32 = vld [vmem:[%s3736_s1] ss:$16 sps:$4 sm:$0xff]   ;;  %v2514_v16 = vld [vmem:[%s3736_s1 + $0xec] ss:$16 sps:$4 sm:$0xff]  }
  0x12   :  { %1294 = vmatpush1.bf16.msra.mxu1 %v2430_v17  ;;  %1254 = vmatprep.subr.bf16.mxu0 %v2431_v18  ;;  %v2451_v31 = vld [vmem:[%s3736_s1 + $0x204] ss:$16 sps:$4 sm:$0xff]   ;;  %v2454_v33 = vld [vmem:[%s3736_s1 + $0x200] ss:$16 sps:$4 sm:$0xff]  }
  0x13   :  { %1295 = vmatprep.subr.bf16.mxu1 %v2433_v19  ;;  %v2455_v34 = vld [vmem:[%s3736_s1 + $0x1e4] ss:$16 sps:$4 sm:$0xff]   ;;  %v2459_v36 = vld [vmem:[%s3736_s1 + $0x1e0] ss:$16 sps:$4 sm:$0xff]  }
  0x14   :  { %v2457_v35 = vld [vmem:[%s3736_s1 + $0x3e4] ss:$16 sps:$4 sm:$0xff]   ;;  %v2460_v37 = vld [vmem:[%s3736_s1 + $0x3e0] ss:$16 sps:$4 sm:$0xff]  }
  0x15   :  { %1255 = vmatpush1.bf16.msra.mxu0 %v2435_v20  ;;  %v2461_v38 = vld [vmem:[%s3736_s1 + $0x1c4] ss:$16 sps:$4 sm:$0xff]   ;;  %v2465_v40 = vld [vmem:[%s3736_s1 + $0x1c0] ss:$16 sps:$4 sm:$0xff]   ;;  %v2512_v20 = vld [vmem:[%s3736_s1 + $0xe8] ss:$16 sps:$4 sm:$0xff]  }
  0x16   :  { %1296 = vmatpush1.bf16.msra.mxu1 %v2436_v21  ;;  %1256 = vmatprep.subr.bf16.mxu0 %v2437_v22  ;;  %v2463_v39 = vld [vmem:[%s3736_s1 + $0x3c4] ss:$16 sps:$4 sm:$0xff]   ;;  %v2466_v41 = vld [vmem:[%s3736_s1 + $0x3c0] ss:$16 sps:$4 sm:$0xff]  }
  0x17   :  { %1297 = vmatprep.subr.bf16.mxu1 %v2439_v23  ;;  %v2467_v42 = vld [vmem:[%s3736_s1 + $0x1a4] ss:$16 sps:$4 sm:$0xff]   ;;  %v2471_v44 = vld [vmem:[%s3736_s1 + $0x1a0] ss:$16 sps:$4 sm:$0xff]   ;;  %v2520_v23 = vld [vmem:[%s3736_s1 + $0xcc] ss:$16 sps:$4 sm:$0xff]  }
  0x18   :  { %v2469_v43 = vld [vmem:[%s3736_s1 + $0x3a4] ss:$16 sps:$4 sm:$0xff]   ;;  %v2472_v45 = vld [vmem:[%s3736_s1 + $0x3a0] ss:$16 sps:$4 sm:$0xff]  }
  0x19   :  { %1257 = vmatpush1.bf16.msra.mxu0 %v2441_v24  ;;  %v2473_v46 = vld [vmem:[%s3736_s1 + $0x184] ss:$16 sps:$4 sm:$0xff]   ;;  %v2477_v49 = vld [vmem:[%s3736_s1 + $0x180] ss:$16 sps:$4 sm:$0xff]  }
  0x1a   :  { %1298 = vmatpush1.bf16.msra.mxu1 %v2442_v25  ;;  %1258 = vmatprep.subr.bf16.mxu0 %v2443_v26  ;;  %v2475_v47 = vld [vmem:[%s3736_s1 + $0x384] ss:$16 sps:$4 sm:$0xff]   ;;  %v2478_v50 = vld [vmem:[%s3736_s1 + $0x380] ss:$16 sps:$4 sm:$0xff]   ;;  %v2518_v25 = vld [vmem:[%s3736_s1 + $0xc8] ss:$16 sps:$4 sm:$0xff]  }
  0x1b   :  { %1299 = vmatprep.subr.bf16.mxu1 %v2445_v27  ;;  %v2479_v53 = vld [vmem:[%s3736_s1 + $0x164] ss:$16 sps:$4 sm:$0xff]   ;;  %v2483_v56 = vld [vmem:[%s3736_s1 + $0x160] ss:$16 sps:$4 sm:$0xff]   ;;  %v2526_v27 = vld [vmem:[%s3736_s1 + $0xac] ss:$16 sps:$4 sm:$0xff]  }
  0x1c   :  { %v2481_v55 = vld [vmem:[%s3736_s1 + $0x364] ss:$16 sps:$4 sm:$0xff]   ;;  %v2484_v57 = vld [vmem:[%s3736_s1 + $0x360] ss:$16 sps:$4 sm:$0xff]  }
  0x1d   :  { %1259 = vmatpush1.bf16.msra.mxu0 %v2447_v28  ;;  %v2485_v58 = vld [vmem:[%s3736_s1 + $0x144] ss:$16 sps:$4 sm:$0xff]   ;;  %v2489_v60 = vld [vmem:[%s3736_s1 + $0x140] ss:$16 sps:$4 sm:$0xff]  }
  0x1e   :  { %1300 = vmatpush1.bf16.msra.mxu1 %v2448_v29  ;;  %1260 = vmatprep.subr.bf16.mxu0 %v2449_v30  ;;  %v2487_v59 = vld [vmem:[%s3736_s1 + $0x344] ss:$16 sps:$4 sm:$0xff]   ;;  %v2490_v61 = vld [vmem:[%s3736_s1 + $0x340] ss:$16 sps:$4 sm:$0xff]   ;;  %v2524_v29 = vld [vmem:[%s3736_s1 + $0xa8] ss:$16 sps:$4 sm:$0xff]  }
  0x1f   :  { %1301 = vmatprep.subr.bf16.mxu1 %v2451_v31  ;;  %v2491_v62 = vld [vmem:[%s3736_s1 + $0x124] ss:$16 sps:$4 sm:$0xff]   ;;  %v2495_v0 = vld [vmem:[%s3736_s1 + $0x120] ss:$16 sps:$4 sm:$0xff]   ;;  %v2532_v31 = vld [vmem:[%s3736_s1 + $0x8c] ss:$16 sps:$4 sm:$0xff]  }
  0x20   :  { %v2493_v63 = vld [vmem:[%s3736_s1 + $0x324] ss:$16 sps:$4 sm:$0xff]   ;;  %v2496_v1 = vld [vmem:[%s3736_s1 + $0x320] ss:$16 sps:$4 sm:$0xff]  }
  0x21   :  { %1261 = vmatpush1.bf16.msra.mxu0 %v2453_v32  ;;  %v2497_v2 = vld [vmem:[%s3736_s1 + $0x104] ss:$16 sps:$4 sm:$0xff]   ;;  %v2501_v5 = vld [vmem:[%s3736_s1 + $0x100] ss:$16 sps:$4 sm:$0xff]  }
  0x22   :  { %1302 = vmatpush1.bf16.msra.mxu1 %v2454_v33  ;;  %1262 = vmatprep.subr.bf16.mxu0 %v2455_v34  ;;  %v2499_v4 = vld [vmem:[%s3736_s1 + $0x304] ss:$16 sps:$4 sm:$0xff]   ;;  %v2502_v6 = vld [vmem:[%s3736_s1 + $0x300] ss:$16 sps:$4 sm:$0xff]   ;;  %v2530_v33 = vld [vmem:[%s3736_s1 + $0x88] ss:$16 sps:$4 sm:$0xff]  }
  0x23   :  { %1303 = vmatprep.subr.bf16.mxu1 %v2457_v35  ;;  %v30_v7 = vld [vmem:[%s3735_s0] sm:$0xff]  ;;  %v32_v8 = vld [vmem:[%s3735_s0 + $0x10] sm:$0xff]  ;;  %v2538_v35 = vld [vmem:[%s3736_s1 + $0x6c] ss:$16 sps:$4 sm:$0xff]  }
  0x24   :  { %v2505_v9 = vld [vmem:[%s3736_s1 + $0x4e4] ss:$16 sps:$4 sm:$0xff]   ;;  %v3085_v11 = vpack.c.bf16 %v30_v7, %v30_v7  ;;  %v3087_v12 = vpack.c.bf16 %v32_v8, %v32_v8  ;;  %v2503_v13 = vld [vmem:[%s3736_s1 + $0x4e0] ss:$16 sps:$4 sm:$0xff]   ;;  %v2586_v7 = vld [vmem:[%s3736_s1 + $0x16c] ss:$16 sps:$4 sm:$0xff]  }
  0x25   :  { %1263 = vmatpush2.bf16.msra.mxu0 %v2459_v36  ;;  %v2508_v10 = vld [vmem:[%s3736_s1 + $0x604] ss:$16 sps:$4 sm:$0xff]   ;;  %v2506_v14 = vld [vmem:[%s3736_s1 + $0x600] ss:$16 sps:$4 sm:$0xff]  }
  0x26   :  { %1304 = vmatpush2.bf16.msra.mxu1 %v2460_v37  ;;  %1264 = vmatprep.subr.bf16.mxu0 %v2461_v38  ;;  %v2511_v15 = vld [vmem:[%s3736_s1 + $0x4c4] ss:$16 sps:$4 sm:$0xff]   ;;  %v2509_v17 = vld [vmem:[%s3736_s1 + $0x4c0] ss:$16 sps:$4 sm:$0xff]   ;;  %v35_v37 = vld [vmem:[%s3735_s0 + $0x28] sm:$0xff] }
  0x27   :  { %1305 = vmatprep.subr.bf16.mxu1 %v2463_v39  ;;  %v36_v18 = vld [vmem:[%s3735_s0 + $0x30] sm:$0xff]  ;;  %v3169_v38 = vpack.c.bf16 %v35_v37, %v35_v37  ;;  %v2536_v39 = vld [vmem:[%s3736_s1 + $0x68] ss:$16 sps:$4 sm:$0xff]  }
  0x28   :  { %v2517_v19 = vld [vmem:[%s3736_s1 + $0x4a4] ss:$16 sps:$4 sm:$0xff]   ;;  %v3116_v21 = vpack.c.bf16 %v36_v18, %v36_v18  ;;  %v2515_v22 = vld [vmem:[%s3736_s1 + $0x4a0] ss:$16 sps:$4 sm:$0xff]   ;;  %v2620_v37 = vld [vmem:[%s3736_s1 + $0x4a8] ss:$16 sps:$4 sm:$0xff]  }
  0x29   :  { %1265 = vmatpush2.bf16.msra.mxu0 %v2465_v40  ;;  %v2523_v24 = vld [vmem:[%s3736_s1 + $0x484] ss:$16 sps:$4 sm:$0xff]   ;;  %v2521_v26 = vld [vmem:[%s3736_s1 + $0x480] ss:$16 sps:$4 sm:$0xff]  }
  0x2a   :  { %1306 = vmatpush2.bf16.msra.mxu1 %v2466_v41  ;;  %1266 = vmatprep.subr.bf16.mxu0 %v2467_v42  ;;  %v2529_v28 = vld [vmem:[%s3736_s1 + $0x464] ss:$16 sps:$4 sm:$0xff]   ;;  %v2527_v30 = vld [vmem:[%s3736_s1 + $0x460] ss:$16 sps:$4 sm:$0xff]   ;;  %v2544_v41 = vld [vmem:[%s3736_s1 + $0x4c] ss:$16 sps:$4 sm:$0xff]  }
  0x2b   :  { %1307 = vmatprep.subr.bf16.mxu1 %v2469_v43  ;;  %v2535_v32 = vld [vmem:[%s3736_s1 + $0x444] ss:$16 sps:$4 sm:$0xff]   ;;  %v2533_v34 = vld [vmem:[%s3736_s1 + $0x440] ss:$16 sps:$4 sm:$0xff]   ;;  %v2542_v43 = vld [vmem:[%s3736_s1 + $0x48] ss:$16 sps:$4 sm:$0xff]  }
  0x2c   :  { %v2541_v36 = vld [vmem:[%s3736_s1 + $0x424] ss:$16 sps:$4 sm:$0xff]   ;;  %v2539_v40 = vld [vmem:[%s3736_s1 + $0x420] ss:$16 sps:$4 sm:$0xff]  }
  0x2d   :  { %1267 = vmatpush2.bf16.msra.mxu0 %v2471_v44  ;;  %v2547_v42 = vld [vmem:[%s3736_s1 + $0x404] ss:$16 sps:$4 sm:$0xff]   ;;  %v2545_v44 = vld [vmem:[%s3736_s1 + $0x400] ss:$16 sps:$4 sm:$0xff]  }
  0x2e   :  { %1308 = vmatpush2.bf16.msra.mxu1 %v2472_v45  ;;  %1268 = vmatprep.subr.bf16.mxu0 %v2473_v46  ;;  %v2550_v45 = vld [vmem:[%s3736_s1 + $0x2c] ss:$16 sps:$4 sm:$0xff]   ;;  %v2553_v46 = vld [vmem:[%s3736_s1 + $0x5e4] ss:$16 sps:$4 sm:$0xff]   ;;  %v2551_v48 = vld [vmem:[%s3736_s1 + $0x5e0] ss:$16 sps:$4 sm:$0xff]  }
  0x2f   :  { %1309 = vmatprep.subr.bf16.mxu1 %v2475_v47  ;;  %v2548_v47 = vld [vmem:[%s3736_s1 + $0x28] ss:$16 sps:$4 sm:$0xff]   ;;  %v2557_v52 = vld [vmem:[%s3736_s1 + $0x5c0] ss:$16 sps:$4 sm:$0xff]   ;;  %v2589_v8 = vld [vmem:[%s3736_s1 + $0x524] ss:$16 sps:$4 sm:$0xff]  }
  0x30   :  { %v34_v18 = vld [vmem:[%s3735_s0 + $0x20] sm:$0xff] }
  0x31   :  { %1269 = vmatpush2.bf16.msra.mxu0 %v2477_v49  ;;  %v2556_v49 = vld [vmem:[%s3736_s1 + $0xc] ss:$16 sps:$4 sm:$0xff]  }
  0x32   :  { %1310 = vmatpush2.bf16.msra.mxu1 %v2478_v50  ;;  %1270 = vmatprep.subr.bf16.mxu0 %v2479_v53  ;;  %v2559_v50 = vld [vmem:[%s3736_s1 + $0x5c4] ss:$16 sps:$4 sm:$0xff]   ;;  %v2562_v53 = vld [vmem:[%s3736_s1 + $0x1ec] ss:$16 sps:$4 sm:$0xff]  }
  0x33   :  { %1311 = vmatprep.subr.bf16.mxu1 %v2481_v55  ;;  %v2565_v55 = vld [vmem:[%s3736_s1 + $0x5a4] ss:$16 sps:$4 sm:$0xff]  }
  0x35   :  { %1271 = vmatpush2.bf16.msra.mxu0 %v2483_v56  ;;  %v2560_v56 = vld [vmem:[%s3736_s1 + $0x1e8] ss:$16 sps:$4 sm:$0xff]  }
  0x36   :  { %1312 = vmatpush2.bf16.msra.mxu1 %v2484_v57  ;;  %1272 = vmatprep.subr.bf16.mxu0 %v2485_v58  ;;  %v2563_v57 = vld [vmem:[%s3736_s1 + $0x5a0] ss:$16 sps:$4 sm:$0xff]   ;;  %v2568_v58 = vld [vmem:[%s3736_s1 + $0x1cc] ss:$16 sps:$4 sm:$0xff]  }
  0x37   :  { %1313 = vmatprep.subr.bf16.mxu1 %v2487_v59  ;;  %v2571_v59 = vld [vmem:[%s3736_s1 + $0x584] ss:$16 sps:$4 sm:$0xff]  }
  0x39   :  { %1273 = vmatpush2.bf16.msra.mxu0 %v2489_v60  ;;  %v2566_v60 = vld [vmem:[%s3736_s1 + $0x1c8] ss:$16 sps:$4 sm:$0xff]  }
  0x3a   :  { %1314 = vmatpush2.bf16.msra.mxu1 %v2490_v61  ;;  %1274 = vmatprep.subr.bf16.mxu0 %v2491_v62  ;;  %v2569_v61 = vld [vmem:[%s3736_s1 + $0x580] ss:$16 sps:$4 sm:$0xff]   ;;  %v2574_v62 = vld [vmem:[%s3736_s1 + $0x1ac] ss:$16 sps:$4 sm:$0xff]  }
  0x3b   :  { %1315 = vmatprep.subr.bf16.mxu1 %v2493_v63  ;;  %v2577_v63 = vld [vmem:[%s3736_s1 + $0x564] ss:$16 sps:$4 sm:$0xff]  }
  0x3d   :  { %1275 = vmatpush2.bf16.msra.mxu0 %v2495_v0  ;;  %v2572_v0 = vld [vmem:[%s3736_s1 + $0x1a8] ss:$16 sps:$4 sm:$0xff]  }
  0x3e   :  { %1316 = vmatpush2.bf16.msra.mxu1 %v2496_v1  ;;  %1276 = vmatprep.subr.bf16.mxu0 %v2497_v2  ;;  %v2575_v1 = vld [vmem:[%s3736_s1 + $0x560] ss:$16 sps:$4 sm:$0xff]   ;;  %v2580_v2 = vld [vmem:[%s3736_s1 + $0x18c] ss:$16 sps:$4 sm:$0xff]  }
  0x3f   :  { %1317 = vmatprep.subr.bf16.mxu1 %v2499_v4  ;;  %v2583_v4 = vld [vmem:[%s3736_s1 + $0x544] ss:$16 sps:$4 sm:$0xff]  }
  0x41   :  { %1277 = vmatpush2.bf16.msra.mxu0 %v2501_v5  ;;  %v2578_v5 = vld [vmem:[%s3736_s1 + $0x188] ss:$16 sps:$4 sm:$0xff]  }
  0x42   :  { %1318 = vmatpush2.bf16.msra.mxu1 %v2502_v6  ;;  %1328 = vmatprep.subr.bf16.mxu0 %v2505_v9  ;;  %v2581_v6 = vld [vmem:[%s3736_s1 + $0x540] ss:$16 sps:$4 sm:$0xff]   ;;  %v2584_v9 = vld [vmem:[%s3736_s1 + $0x168] ss:$16 sps:$4 sm:$0xff]  }
  0x43   :  { %1383 = vmatprep.subr.bf16.mxu1 %v2508_v10  ;;  %v2587_v10 = vld [vmem:[%s3736_s1 + $0x520] ss:$16 sps:$4 sm:$0xff]  }
  0x44   :  { %1279 = vmatmul.mubr.bf16.vlgmr.msra.gmra.mxu0 %v3085_v11 }
  0x45   :  { %1320 = vmatmul.mubr.bf16.vlgmr.msra.gmra.mxu1 %v3087_v12  ;;  %1329 = vmatpush1.bf16.msra.mxu0 %v2503_v13  ;;  %v2592_v13 = vld [vmem:[%s3736_s1 + $0x14c] ss:$16 sps:$4 sm:$0xff]  }
  0x46   :  { %1384 = vmatpush1.bf16.msra.mxu1 %v2506_v14  ;;  %1330 = vmatprep.subr.bf16.mxu0 %v2511_v15  ;;  %v2595_v14 = vld [vmem:[%s3736_s1 + $0x504] ss:$16 sps:$4 sm:$0xff]   ;;  %v2590_v15 = vld [vmem:[%s3736_s1 + $0x148] ss:$16 sps:$4 sm:$0xff]  }
  0x47   :  { %1401 = vmatprep.mubr.bf16.mxu1 %v2823_v3  ;;  %1410 = vmatprep.subr.bf16.mxu1 %v2514_v16  ;;  %v2593_v16 = vld [vmem:[%s3736_s1 + $0x500] ss:$16 sps:$4 sm:$0xff]  }
  0x48   :  { %1360 = vmatprep.mubr.bf16.mxu0 %v3169_v38 }
  0x49   :  { %1331 = vmatpush1.bf16.msra.mxu0 %v2509_v17  ;;  %v2598_v17 = vld [vmem:[%s3736_s1 + $0x12c] ss:$16 sps:$4 sm:$0xff]  }
  0x4a   :  { %1332 = vmatprep.subr.bf16.mxu0 %v2517_v19  ;;  %v2601_v19 = vld [vmem:[%s3736_s1 + $0x2ec] ss:$16 sps:$4 sm:$0xff]  }
  0x4d   :  { %2337 = vmatmul.mubr.msk.bf16.vlgmr.msra.gmra.mxu1 %vm1242_vm0, %v3116_v21  ;;  %1333 = vmatpush1.bf16.msra.mxu0 %v2515_v22  ;;  %v3298_v22 = vpack.c.bf16 %v34_v18, %v34_v18 }
  0x4e   :  { %1411 = vmatpush1.bf16.msra.mxu1 %v2512_v20  ;;  %1334 = vmatprep.subr.bf16.mxu0 %v2523_v24  ;;  %v2596_v20 = vld [vmem:[%s3736_s1 + $0x128] ss:$16 sps:$4 sm:$0xff]   ;;  %v2604_v24 = vld [vmem:[%s3736_s1 + $0x10c] ss:$16 sps:$4 sm:$0xff]  }
  0x4f   :  { %1412 = vmatprep.subr.bf16.mxu1 %v2520_v23  ;;  %1442 = vmatprep.mubr.bf16.mxu1 %v3016_v51  ;;  %v2554_v51 = vld [vmem:[%s3736_s1 + $0x8] ss:$16 sps:$4 sm:$0xff]  }
  0x50   :  { %v2599_v23 = vld [vmem:[%s3736_s1 + $0x2e8] ss:$16 sps:$4 sm:$0xff]  }
  0x51   :  { %1335 = vmatpush1.bf16.msra.mxu0 %v2521_v26  ;;  %v2602_v26 = vld [vmem:[%s3736_s1 + $0x108] ss:$16 sps:$4 sm:$0xff]  }
  0x52   :  { %1413 = vmatpush1.bf16.msra.mxu1 %v2518_v25  ;;  %1336 = vmatprep.subr.bf16.mxu0 %v2529_v28  ;;  %v2607_v25 = vld [vmem:[%s3736_s1 + $0x2cc] ss:$16 sps:$4 sm:$0xff]  }
  0x53   :  { %1414 = vmatprep.subr.bf16.mxu1 %v2526_v27  ;;  %v2605_v27 = vld [vmem:[%s3736_s1 + $0x2c8] ss:$16 sps:$4 sm:$0xff]   ;;  %v2610_v28 = vld [vmem:[%s3736_s1 + $0x4ec] ss:$16 sps:$4 sm:$0xff]  }
  0x55   :  { %1337 = vmatpush1.bf16.msra.mxu0 %v2527_v30  ;;  %v2608_v30 = vld [vmem:[%s3736_s1 + $0x4e8] ss:$16 sps:$4 sm:$0xff]  }
  0x56   :  { %1415 = vmatpush1.bf16.msra.mxu1 %v2524_v29  ;;  %1338 = vmatprep.subr.bf16.mxu0 %v2535_v32  ;;  %v2613_v29 = vld [vmem:[%s3736_s1 + $0x2ac] ss:$16 sps:$4 sm:$0xff]  }
  0x57   :  { %1416 = vmatprep.subr.bf16.mxu1 %v2532_v31  ;;  %v2611_v31 = vld [vmem:[%s3736_s1 + $0x2a8] ss:$16 sps:$4 sm:$0xff]   ;;  %v2616_v32 = vld [vmem:[%s3736_s1 + $0x4cc] ss:$16 sps:$4 sm:$0xff]  }
  0x59   :  { %1339 = vmatpush1.bf16.msra.mxu0 %v2533_v34  ;;  %v2614_v34 = vld [vmem:[%s3736_s1 + $0x4c8] ss:$16 sps:$4 sm:$0xff]  }
  0x5a   :  { %1417 = vmatpush1.bf16.msra.mxu1 %v2530_v33  ;;  %1340 = vmatprep.subr.bf16.mxu0 %v2541_v36  ;;  %v2619_v33 = vld [vmem:[%s3736_s1 + $0x28c] ss:$16 sps:$4 sm:$0xff]  }
  0x5b   :  { %1418 = vmatprep.subr.bf16.mxu1 %v2538_v35  ;;  %v2622_v35 = vld [vmem:[%s3736_s1 + $0x4ac] ss:$16 sps:$4 sm:$0xff]  }
  0x5c   :  { %v2625_v36 = vld [vmem:[%s3736_s1 + $0x26c] ss:$16 sps:$4 sm:$0xff]  }
  0x5d   :  { %1341 = vmatpush1.bf16.msra.mxu0 %v2539_v40  ;;  %v2626_v40 = vld [vmem:[%s3736_s1 + $0x488] ss:$16 sps:$4 sm:$0xff]  }
  0x5e   :  { %1419 = vmatpush1.bf16.msra.mxu1 %v2536_v39  ;;  %1342 = vmatprep.subr.bf16.mxu0 %v2547_v42  ;;  %v2628_v39 = vld [vmem:[%s3736_s1 + $0x48c] ss:$16 sps:$4 sm:$0xff]  }
  0x5f   :  { %1420 = vmatprep.subr.bf16.mxu1 %v2544_v41  ;;  %v2629_v41 = vld [vmem:[%s3736_s1 + $0x248] ss:$16 sps:$4 sm:$0xff]   ;;  %v2634_v42 = vld [vmem:[%s3736_s1 + $0x46c] ss:$16 sps:$4 sm:$0xff]  }
  0x61   :  { %1343 = vmatpush1.bf16.msra.mxu0 %v2545_v44  ;;  %v2632_v44 = vld [vmem:[%s3736_s1 + $0x468] ss:$16 sps:$4 sm:$0xff]  }
  0x62   :  { %1421 = vmatpush1.bf16.msra.mxu1 %v2542_v43  ;;  %1344 = vmatprep.subr.bf16.mxu0 %v2553_v46  ;;  %v2637_v43 = vld [vmem:[%s3736_s1 + $0x22c] ss:$16 sps:$4 sm:$0xff]  }
  0x63   :  { %1422 = vmatprep.subr.bf16.mxu1 %v2550_v45  ;;  %v2635_v45 = vld [vmem:[%s3736_s1 + $0x228] ss:$16 sps:$4 sm:$0xff]   ;;  %v2640_v46 = vld [vmem:[%s3736_s1 + $0x44c] ss:$16 sps:$4 sm:$0xff]  }
  0x65   :  { %1345 = vmatpush2.bf16.msra.mxu0 %v2551_v48  ;;  %v2638_v48 = vld [vmem:[%s3736_s1 + $0x448] ss:$16 sps:$4 sm:$0xff]  }
  0x66   :  { %1423 = vmatpush1.bf16.msra.mxu1 %v2548_v47  ;;  %1346 = vmatprep.subr.bf16.mxu0 %v2559_v50  ;;  %v2643_v47 = vld [vmem:[%s3736_s1 + $0x20c] ss:$16 sps:$4 sm:$0xff]  }
  0x67   :  { %1424 = vmatprep.subr.bf16.mxu1 %v2556_v49  ;;  %v2641_v49 = vld [vmem:[%s3736_s1 + $0x208] ss:$16 sps:$4 sm:$0xff]   ;;  %v2646_v50 = vld [vmem:[%s3736_s1 + $0x42c] ss:$16 sps:$4 sm:$0xff]  }
  0x69   :  { %1347 = vmatpush2.bf16.msra.mxu0 %v2557_v52  ;;  %v2644_v52 = vld [vmem:[%s3736_s1 + $0x428] ss:$16 sps:$4 sm:$0xff]  }
  0x6a   :  { %1425 = vmatpush1.bf16.msra.mxu1 %v2554_v51  ;;  %1348 = vmatprep.subr.bf16.mxu0 %v2565_v55  ;;  %v2649_v51 = vld [vmem:[%s3736_s1 + $0x3ec] ss:$16 sps:$4 sm:$0xff]  }
  0x6b   :  { %1426 = vmatprep.subr.bf16.mxu1 %v2562_v53  ;;  %v2647_v53 = vld [vmem:[%s3736_s1 + $0x3e8] ss:$16 sps:$4 sm:$0xff]   ;;  %v2652_v55 = vld [vmem:[%s3736_s1 + $0x40c] ss:$16 sps:$4 sm:$0xff]  }
  0x6d   :  { %1349 = vmatpush2.bf16.msra.mxu0 %v2563_v57 }
  0x6e   :  { %1427 = vmatpush2.bf16.msra.mxu1 %v2560_v56  ;;  %1350 = vmatprep.subr.bf16.mxu0 %v2571_v59  ;;  %v2655_v56 = vld [vmem:[%s3736_s1 + $0x3cc] ss:$16 sps:$4 sm:$0xff]  }
  0x6f   :  { %1428 = vmatprep.subr.bf16.mxu1 %v2568_v58 }
  0x71   :  { %1351 = vmatpush2.bf16.msra.mxu0 %v2569_v61 }
  0x72   :  { %1429 = vmatpush2.bf16.msra.mxu1 %v2566_v60  ;;  %1352 = vmatprep.subr.bf16.mxu0 %v2577_v63 }
  0x73   :  { %1430 = vmatprep.subr.bf16.mxu1 %v2574_v62 }
  0x75   :  { %1353 = vmatpush2.bf16.msra.mxu0 %v2575_v1 }
  0x76   :  { %1431 = vmatpush2.bf16.msra.mxu1 %v2572_v0  ;;  %1354 = vmatprep.subr.bf16.mxu0 %v2583_v4 }
  0x77   :  { %1432 = vmatprep.subr.bf16.mxu1 %v2580_v2 }
  0x79   :  { %1355 = vmatpush2.bf16.msra.mxu0 %v2581_v6 }
  0x7a   :  { %1433 = vmatpush2.bf16.msra.mxu1 %v2578_v5  ;;  %1356 = vmatprep.subr.bf16.mxu0 %v2589_v8 }
  0x7b   :  { %1434 = vmatprep.subr.bf16.mxu1 %v2586_v7 }
  0x7d   :  { %1357 = vmatpush2.bf16.msra.mxu0 %v2587_v10 }
  0x7e   :  { %1435 = vmatpush2.bf16.msra.mxu1 %v2584_v9  ;;  %1358 = vmatprep.subr.bf16.mxu0 %v2595_v14 }
  0x7f   :  { %1436 = vmatprep.subr.bf16.mxu1 %v2592_v13 }
  0x81   :  { %1359 = vmatpush2.bf16.msra.mxu0 %v2593_v16 }
  0x82   :  { %1437 = vmatpush2.bf16.msra.mxu1 %v2590_v15  ;;  %1451 = vmatprep.subr.bf16.mxu0 %v2601_v19 }
  0x83   :  { %1438 = vmatprep.subr.bf16.mxu1 %v2598_v17 }
  0x84   :  { %1361 = vmatmul.mubr.bf16.vlgmr.msra.gmra.mxu0 %v3298_v22 }
  0x85   :  { %1452 = vmatpush1.bf16.msra.mxu0 %v2599_v23  ;;  %1483 = vmatprep.mubr.bf16.mxu0 %v3024_v54  ;;  %v2617_v54 = vld [vmem:[%s3736_s1 + $0x288] ss:$16 sps:$4 sm:$0xff]  }
  0x86   :  { %1439 = vmatpush2.bf16.msra.mxu1 %v2596_v20  ;;  %1453 = vmatprep.subr.bf16.mxu0 %v2607_v25 }
  0x87   :  { %1440 = vmatprep.subr.bf16.mxu1 %v2604_v24 }
  0x89   :  { %1454 = vmatpush1.bf16.msra.mxu0 %v2605_v27 }
  0x8a   :  { %1441 = vmatpush2.bf16.msra.mxu1 %v2602_v26  ;;  %1455 = vmatprep.subr.bf16.mxu0 %v2613_v29 }
  0x8b   :  { %1492 = vmatprep.subr.bf16.mxu1 %v2610_v28 }
  0x8d   :  { %1443 = vmatmul.mubr.bf16.vlgmr.msra.gmra.mxu1 %v3085_v11  ;;  %1456 = vmatpush1.bf16.msra.mxu0 %v2611_v31  ;;  %v2623_v11 = vld [vmem:[%s3736_s1 + $0x268] ss:$16 sps:$4 sm:$0xff]  }
  0x8e   :  { %1493 = vmatpush1.bf16.msra.mxu1 %v2608_v30  ;;  %1457 = vmatprep.subr.bf16.mxu0 %v2619_v33 }
  0x8f   :  { %1494 = vmatprep.subr.bf16.mxu1 %v2616_v32  ;;  %1524 = vmatprep.mubr.bf16.mxu1 %v3169_v38  ;;  %v2631_v38 = vld [vmem:[%s3736_s1 + $0x24c] ss:$16 sps:$4 sm:$0xff]  }
  0x91   :  { %1458 = vmatpush1.bf16.msra.mxu0 %v2617_v54 }
  0x92   :  { %1495 = vmatpush1.bf16.msra.mxu1 %v2614_v34  ;;  %1459 = vmatprep.subr.bf16.mxu0 %v2625_v36 }
  0x93   :  { %1496 = vmatprep.subr.bf16.mxu1 %v2622_v35 }
  0x95   :  { %1460 = vmatpush1.bf16.msra.mxu0 %v2623_v11 }
  0x96   :  { %1497 = vmatpush1.bf16.msra.mxu1 %v2620_v37  ;;  %1461 = vmatprep.subr.bf16.mxu0 %v2631_v38 }
  0x97   :  { %1498 = vmatprep.subr.bf16.mxu1 %v2628_v39 }
  0x99   :  { %1462 = vmatpush1.bf16.msra.mxu0 %v2629_v41 }
  0x9a   :  { %1499 = vmatpush1.bf16.msra.mxu1 %v2626_v40  ;;  %1463 = vmatprep.subr.bf16.mxu0 %v2637_v43 }
  0x9b   :  { %1500 = vmatprep.subr.bf16.mxu1 %v2634_v42 }
  0x9d   :  { %1464 = vmatpush1.bf16.msra.mxu0 %v2635_v45 }
  0x9e   :  { %1501 = vmatpush1.bf16.msra.mxu1 %v2632_v44  ;;  %1465 = vmatprep.subr.bf16.mxu0 %v2643_v47 }
  0x9f   :  { %1502 = vmatprep.subr.bf16.mxu1 %v2640_v46 }
  0xa1   :  { %1466 = vmatpush1.bf16.msra.mxu0 %v2641_v49 }
  0xa2   :  { %1503 = vmatpush1.bf16.msra.mxu1 %v2638_v48  ;;  %1467 = vmatprep.subr.bf16.mxu0 %v2649_v51 }
  0xa3   :  { %1504 = vmatprep.subr.bf16.mxu1 %v2646_v50 }
  0xa4   :  { %14 = vsyncpa [#allocation4], 0  ;;  %v2650_v57 = vld [vmem:[%s3736_s1 + $0x408] ss:$16 sps:$4 sm:$0xff]   ;;  %v2658_v59 = vld [vmem:[%s3736_s1 + $0x5ec] ss:$16 sps:$4 sm:$0xff]  }
  0xa5   :  { %1468 = vmatpush2.bf16.msra.mxu0 %v2647_v53  ;;  %v2653_v58 = vld [vmem:[%s3736_s1 + $0x3c8] ss:$16 sps:$4 sm:$0xff]   ;;  %v2661_v60 = vld [vmem:[%s3736_s1 + $0x3ac] ss:$16 sps:$4 sm:$0xff]   ;;  %vm2125_vm7 = vcmask 57344  }
  0xa6   :  { %1505 = vmatpush1.bf16.msra.mxu1 %v2644_v52  ;;  %1469 = vmatprep.subr.bf16.mxu0 %v2655_v56  ;;  %v2656_v61 = vld [vmem:[%s3736_s1 + $0x5e8] ss:$16 sps:$4 sm:$0xff]   ;;  %v2664_v63 = vld [vmem:[%s3736_s1 + $0x5cc] ss:$16 sps:$4 sm:$0xff]  }
  0xa7   :  { %1506 = vmatprep.subr.bf16.mxu1 %v2652_v55  ;;  %v2659_v62 = vld [vmem:[%s3736_s1 + $0x3a8] ss:$16 sps:$4 sm:$0xff]   ;;  %v2667_v0 = vld [vmem:[%s3736_s1 + $0x38c] ss:$16 sps:$4 sm:$0xff]  }
  0xa8   :  { %v2662_v1 = vld [vmem:[%s3736_s1 + $0x5c8] ss:$16 sps:$4 sm:$0xff]   ;;  %v2670_v4 = vld [vmem:[%s3736_s1 + $0x5ac] ss:$16 sps:$4 sm:$0xff]  }
  0xa9   :  { %1470 = vmatpush2.bf16.msra.mxu0 %v2653_v58  ;;  %v2665_v2 = vld [vmem:[%s3736_s1 + $0x388] ss:$16 sps:$4 sm:$0xff]   ;;  %v2673_v5 = vld [vmem:[%s3736_s1 + $0x36c] ss:$16 sps:$4 sm:$0xff]  }
  0xaa   :  { %1507 = vmatpush1.bf16.msra.mxu1 %v2650_v57  ;;  %1471 = vmatprep.subr.bf16.mxu0 %v2661_v60  ;;  %v2668_v6 = vld [vmem:[%s3736_s1 + $0x5a8] ss:$16 sps:$4 sm:$0xff]   ;;  %v2676_v8 = vld [vmem:[%s3736_s1 + $0x58c] ss:$16 sps:$4 sm:$0xff]  }
  0xab   :  { %1508 = vmatprep.subr.bf16.mxu1 %v2658_v59  ;;  %v2671_v7 = vld [vmem:[%s3736_s1 + $0x368] ss:$16 sps:$4 sm:$0xff]   ;;  %v2679_v9 = vld [vmem:[%s3736_s1 + $0x34c] ss:$16 sps:$4 sm:$0xff]  }
  0xac   :  { %v2674_v10 = vld [vmem:[%s3736_s1 + $0x588] ss:$16 sps:$4 sm:$0xff]   ;;  %v2682_v14 = vld [vmem:[%s3736_s1 + $0x56c] ss:$16 sps:$4 sm:$0xff]  }
  0xad   :  { %1472 = vmatpush2.bf16.msra.mxu0 %v2659_v62  ;;  %v2677_v13 = vld [vmem:[%s3736_s1 + $0x348] ss:$16 sps:$4 sm:$0xff]   ;;  %v2685_v15 = vld [vmem:[%s3736_s1 + $0x32c] ss:$16 sps:$4 sm:$0xff]  }
  0xae   :  { %1509 = vmatpush2.bf16.msra.mxu1 %v2656_v61  ;;  %1473 = vmatprep.subr.bf16.mxu0 %v2667_v0  ;;  %v2680_v16 = vld [vmem:[%s3736_s1 + $0x568] ss:$16 sps:$4 sm:$0xff]   ;;  %v2688_v18 = vld [vmem:[%s3736_s1 + $0x54c] ss:$16 sps:$4 sm:$0xff]  }
  0xaf   :  { %1510 = vmatprep.subr.bf16.mxu1 %v2664_v63  ;;  %v2683_v17 = vld [vmem:[%s3736_s1 + $0x328] ss:$16 sps:$4 sm:$0xff]   ;;  %v2691_v19 = vld [vmem:[%s3736_s1 + $0x30c] ss:$16 sps:$4 sm:$0xff]  }
  0xb0   :  { %v2686_v20 = vld [vmem:[%s3736_s1 + $0x548] ss:$16 sps:$4 sm:$0xff]   ;;  %v2694_v24 = vld [vmem:[%s3736_s1 + $0x52c] ss:$16 sps:$4 sm:$0xff]  }
  0xb1   :  { %1474 = vmatpush2.bf16.msra.mxu0 %v2665_v2  ;;  %v2689_v23 = vld [vmem:[%s3736_s1 + $0x308] ss:$16 sps:$4 sm:$0xff]   ;;  %v2697_v25 = vld [vmem:[%s3736_s1 + $0x60c] ss:$16 sps:$4 sm:$0xff]  }
  0xb2   :  { %1511 = vmatpush2.bf16.msra.mxu1 %v2662_v1  ;;  %1475 = vmatprep.subr.bf16.mxu0 %v2673_v5  ;;  %v2692_v26 = vld [vmem:[%s3736_s1 + $0x528] ss:$16 sps:$4 sm:$0xff]   ;;  %v2700_v28 = vld [vmem:[%s3736_s1 + $0x50c] ss:$16 sps:$4 sm:$0xff]  }
  0xb3   :  { %1512 = vmatprep.subr.bf16.mxu1 %v2670_v4  ;;  %v2695_v27 = vld [vmem:[%s3736_s1 + $0x608] ss:$16 sps:$4 sm:$0xff]   ;;  %v2703_v29 = vld [vmem:[%s3738_s3 + $0x74] ss:$8 sps:$4 sm:$0xff]   ;;  %v2706_v32 = vld [vmem:[%s3738_s3 + $0x64] ss:$8 sps:$4 sm:$0xff]  }
  0xb4   :  { %v2698_v30 = vld [vmem:[%s3736_s1 + $0x508] ss:$16 sps:$4 sm:$0xff]   ;;  %v2751_v34 = vld [vmem:[%s3738_s3 + $0x174] ss:$8 sps:$4 sm:$0xff]   ;;  %v2754_v54 = vld [vmem:[%s3738_s3 + $0x164] ss:$8 sps:$4 sm:$0xff]  }
  0xb5   :  { %1476 = vmatpush2.bf16.msra.mxu0 %v2671_v7  ;;  %v2701_v31 = vld [vmem:[%s3738_s3 + $0x70] ss:$8 sps:$4 sm:$0xff]   ;;  %v2710_v35 = vld [vmem:[%s3738_s3 + $0x40] ss:$8 sps:$4 sm:$0xff]   ;;  %v2715_v37 = vld [vmem:[%s3738_s3 + $0x34] ss:$8 sps:$4 sm:$0xff]  }
  0xb6   :  { %1513 = vmatpush2.bf16.msra.mxu1 %v2668_v6  ;;  %1477 = vmatprep.subr.bf16.mxu0 %v2679_v9  ;;  %v2707_v33 = vld [vmem:[%s3738_s3 + $0x50] ss:$8 sps:$4 sm:$0xff]   ;;  %v2752_v36 = vld [vmem:[%s3738_s3 + $0x160] ss:$8 sps:$4 sm:$0xff]   ;;  %v2757_v11 = vld [vmem:[%s3738_s3 + $0x154] ss:$8 sps:$4 sm:$0xff]  }
  0xb7   :  { %1514 = vmatprep.subr.bf16.mxu1 %v2676_v8  ;;  %v2713_v39 = vld [vmem:[%s3738_s3 + $0x30] ss:$8 sps:$4 sm:$0xff]   ;;  %v2718_v40 = vld [vmem:[%s3738_s3 + $0x24] ss:$8 sps:$4 sm:$0xff]   ;;  %v2716_v42 = vld [vmem:[%s3738_s3 + $0x20] ss:$8 sps:$4 sm:$0xff]  }
  0xb8   :  { %v2755_v38 = vld [vmem:[%s3738_s3 + $0x150] ss:$8 sps:$4 sm:$0xff]   ;;  %v2760_v41 = vld [vmem:[%s3738_s3 + $0x144] ss:$8 sps:$4 sm:$0xff]   ;;  %v2758_v43 = vld [vmem:[%s3738_s3 + $0x140] ss:$8 sps:$4 sm:$0xff]  }
  0xb9   :  { %1478 = vmatpush2.bf16.msra.mxu0 %v2677_v13  ;;  %v2721_v44 = vld [vmem:[%s3738_s3 + $0x14] ss:$8 sps:$4 sm:$0xff]   ;;  %v2719_v46 = vld [vmem:[%s3738_s3 + $0x10] ss:$8 sps:$4 sm:$0xff]   ;;  %v2724_v48 = vld [vmem:[%s3738_s3 + $0x4] ss:$8 sps:$4 sm:$0xff]  }
  0xba   :  { %1515 = vmatpush2.bf16.msra.mxu1 %v2674_v10  ;;  %1479 = vmatprep.subr.bf16.mxu0 %v2685_v15  ;;  %v2763_v45 = vld [vmem:[%s3738_s3 + $0x134] ss:$8 sps:$4 sm:$0xff]   ;;  %v2761_v47 = vld [vmem:[%s3738_s3 + $0x130] ss:$8 sps:$4 sm:$0xff]   ;;  %v2766_v49 = vld [vmem:[%s3738_s3 + $0x124] ss:$8 sps:$4 sm:$0xff]  }
  0xbb   :  { %1516 = vmatprep.subr.bf16.mxu1 %v2682_v14  ;;  %v2722_v50 = vld [vmem:[%s3738_s3] ss:$8 sps:$4 sm:$0xff]   ;;  %v2727_v52 = vld [vmem:[%s3738_s3 + $0xf4] ss:$8 sps:$4 sm:$0xff]   ;;  %v2725_v55 = vld [vmem:[%s3738_s3 + $0xf0] ss:$8 sps:$4 sm:$0xff]  }
  0xbc   :  { %v2764_v51 = vld [vmem:[%s3738_s3 + $0x120] ss:$8 sps:$4 sm:$0xff]   ;;  %v2769_v53 = vld [vmem:[%s3738_s3 + $0x114] ss:$8 sps:$4 sm:$0xff]   ;;  %v2767_v56 = vld [vmem:[%s3738_s3 + $0x110] ss:$8 sps:$4 sm:$0xff]  }
  0xbd   :  { %1480 = vmatpush2.bf16.msra.mxu0 %v2683_v17  ;;  %v2730_v57 = vld [vmem:[%s3738_s3 + $0xe4] ss:$8 sps:$4 sm:$0xff]   ;;  %v2728_v59 = vld [vmem:[%s3738_s3 + $0xe0] ss:$8 sps:$4 sm:$0xff]   ;;  %v2733_v61 = vld [vmem:[%s3738_s3 + $0xd4] ss:$8 sps:$4 sm:$0xff]  }
  0xbe   :  { %1517 = vmatpush2.bf16.msra.mxu1 %v2680_v16  ;;  %1481 = vmatprep.subr.bf16.mxu0 %v2691_v19  ;;  %v2772_v58 = vld [vmem:[%s3738_s3 + $0x104] ss:$8 sps:$4 sm:$0xff]   ;;  %v2770_v60 = vld [vmem:[%s3738_s3 + $0x100] ss:$8 sps:$4 sm:$0xff]   ;;  %v2775_v62 = vld [vmem:[%s3738_s3 + $0x1f4] ss:$8 sps:$4 sm:$0xff]  }
  0xbf   :  { %1518 = vmatprep.subr.bf16.mxu1 %v2688_v18  ;;  %v2731_v63 = vld [vmem:[%s3738_s3 + $0xd0] ss:$8 sps:$4 sm:$0xff]   ;;  %v2736_v1 = vld [vmem:[%s3738_s3 + $0xc4] ss:$8 sps:$4 sm:$0xff]   ;;  %v2734_v4 = vld [vmem:[%s3738_s3 + $0xc0] ss:$8 sps:$4 sm:$0xff]  }
  0xc0   :  { %v2773_v0 = vld [vmem:[%s3738_s3 + $0x1f0] ss:$8 sps:$4 sm:$0xff]   ;;  %v2778_v2 = vld [vmem:[%s3738_s3 + $0x1e4] ss:$8 sps:$4 sm:$0xff]   ;;  %v2776_v5 = vld [vmem:[%s3738_s3 + $0x1e0] ss:$8 sps:$4 sm:$0xff]  }
  0xc1   :  { %1482 = vmatpush2.bf16.msra.mxu0 %v2689_v23  ;;  %v2739_v6 = vld [vmem:[%s3738_s3 + $0xb4] ss:$8 sps:$4 sm:$0xff]   ;;  %v2737_v8 = vld [vmem:[%s3738_s3 + $0xb0] ss:$8 sps:$4 sm:$0xff]   ;;  %v2742_v10 = vld [vmem:[%s3738_s3 + $0xa4] ss:$8 sps:$4 sm:$0xff]  }
  0xc2   :  { %1519 = vmatpush2.bf16.msra.mxu1 %v2686_v20  ;;  %1547 = vmatprep.subr.bf16.mxu0 %v2697_v25  ;;  %v2781_v7 = vld [vmem:[%s3738_s3 + $0x1d4] ss:$8 sps:$4 sm:$0xff]   ;;  %v2779_v9 = vld [vmem:[%s3738_s3 + $0x1d0] ss:$8 sps:$4 sm:$0xff]   ;;  %v2740_v13 = vld [vmem:[%s3738_s3 + $0xa0] ss:$8 sps:$4 sm:$0xff]  }
  0xc3   :  { %1520 = vmatprep.subr.bf16.mxu1 %v2694_v24  ;;  %v2745_v14 = vld [vmem:[%s3738_s3 + $0x94] ss:$8 sps:$4 sm:$0xff]   ;;  %v2743_v15 = vld [vmem:[%s3738_s3 + $0x90] ss:$8 sps:$4 sm:$0xff]   ;;  %v2748_v16 = vld [vmem:[%s3738_s3 + $0x84] ss:$8 sps:$4 sm:$0xff]  }
  0xc4   :  { %1484 = vmatmul.mubr.bf16.vlgmr.msra.gmra.mxu0 %v3087_v12  ;;  %v2709_v12 = vld [vmem:[%s3738_s3 + $0x54] ss:$8 sps:$4 sm:$0xff]   ;;  %v2784_v17 = vld [vmem:[%s3738_s3 + $0x1c4] ss:$8 sps:$4 sm:$0xff]   ;;  %v2782_v20 = vld [vmem:[%s3738_s3 + $0x1c0] ss:$8 sps:$4 sm:$0xff]  }
  0xc5   :  { %1548 = vmatpush1.bf16.msra.mxu0 %v2695_v27  ;;  %1565 = vmatprep.mubr.bf16.mxu0 %v2823_v3  ;;  %v2704_v3 = vld [vmem:[%s3738_s3 + $0x60] ss:$8 sps:$4 sm:$0xff]  }
  0xc6   :  { %1521 = vmatpush2.bf16.msra.mxu1 %v2692_v26  ;;  %1986 = vmatprep.subr.bf16.mxu0 %v2703_v29  ;;  %v2746_v23 = vld [vmem:[%s3738_s3 + $0x80] ss:$8 sps:$4 sm:$0xff]   ;;  %v2787_v26 = vld [vmem:[%s3738_s3 + $0x1b4] ss:$8 sps:$4 sm:$0xff]   ;;  %v2785_v29 = vld [vmem:[%s3738_s3 + $0x1b0] ss:$8 sps:$4 sm:$0xff]  }
  0xc7   :  { %1522 = vmatprep.subr.bf16.mxu1 %v2700_v28 }
  0xca   :  { %1523 = vmatpush2.bf16.msra.mxu1 %v2698_v30 }
  0xcb   :  { %2027 = vmatprep.subr.bf16.mxu1 %v2751_v34  ;;  %v2791_v34 = vld [vmem:[%s3738_s3 + $0x190] ss:$8 sps:$4 sm:$0xff]  }
  0xcc   :  { %2338 = vmatmul.mubr.msk.bf16.vlgmr.msra.gmra.mxu0 %vm1242_vm0, %v3116_v21  ;;  %v2712_v21 = vld [vmem:[%s3738_s3 + $0x44] ss:$8 sps:$4 sm:$0xff]  }
  0xcd   :  { %1525 = vmatmul.mubr.bf16.vlgmr.msra.gmra.mxu1 %v3298_v22  ;;  %1987 = vmatpush1.bf16.msra.mxu0 %v2701_v31  ;;  %v2749_v22 = vld [vmem:[%s3738_s3 + $0x170] ss:$8 sps:$4 sm:$0xff]  }
  0xce   :  { %1988 = vmatprep.subr.bf16.mxu0 %v2706_v32  ;;  %2028 = vmatpush1.bf16.msra.mxu1 %v2749_v22  ;;  %v2790_v32 = vld [vmem:[%s3738_s3 + $0x1a4] ss:$8 sps:$4 sm:$0xff]  }
  0xcf   :  { %2029 = vmatprep.subr.bf16.mxu1 %v2754_v54 }
  0xd1   :  { %1989 = vmatpush1.bf16.msra.mxu0 %v2704_v3 }
  0xd2   :  { %1990 = vmatprep.subr.bf16.mxu0 %v2709_v12  ;;  %2030 = vmatpush1.bf16.msra.mxu1 %v2752_v36  ;;  %v2788_v12 = vld [vmem:[%s3738_s3 + $0x1a0] ss:$8 sps:$4 sm:$0xff]  }
  0xd3   :  { %2031 = vmatprep.subr.bf16.mxu1 %v2757_v11  ;;  %v2794_v36 = vld [vmem:[%s3738_s3 + $0x180] ss:$8 sps:$4 sm:$0xff]  }
  0xd5   :  { %1991 = vmatpush1.bf16.msra.mxu0 %v2707_v33 }
  0xd6   :  { %1992 = vmatprep.subr.bf16.mxu0 %v2712_v21  ;;  %2032 = vmatpush1.bf16.msra.mxu1 %v2755_v38  ;;  %v2793_v21 = vld [vmem:[%s3738_s3 + $0x194] ss:$8 sps:$4 sm:$0xff]   ;;  %v240_v38 = vld [vmem:[%s3737_s2] sm:$0xf] }
  0xd7   :  { %2033 = vmatprep.subr.bf16.mxu1 %v2760_v41 }
  0xd9   :  { %1993 = vmatpush1.bf16.msra.mxu0 %v2710_v35  ;;  %v2796_v35 = vld [vmem:[%s3738_s3 + $0x184] ss:$8 sps:$4 sm:$0xff]  }
  0xda   :  { %1994 = vmatprep.subr.bf16.mxu0 %v2715_v37  ;;  %2034 = vmatpush1.bf16.msra.mxu1 %v2758_v43  ;;  %v242_v37 = vlaneseq }
  0xdb   :  { %2035 = vmatprep.subr.bf16.mxu1 %v2763_v45 }
  0xdc   :  { %v3703_v11 = vshrl.u32 %v242_v37, 7 }
  0xdd   :  { %1995 = vmatpush1.bf16.msra.mxu0 %v2713_v39 }
  0xde   :  { %1996 = vmatprep.subr.bf16.mxu0 %v2718_v40  ;;  %2036 = vmatpush1.bf16.msra.mxu1 %v2761_v47  ;;  %v3706_v39 = vsub.s32 0, %v3703_v11  ;;  %v248_v40 = vsub.s32 1, %v3703_v11 }
  0xdf   :  { %2037 = vmatprep.subr.bf16.mxu1 %v2766_v49 }
  0xe0   :  { %v245_v41 = vrot.slane %v240_v38, %v3706_v39 }
  0xe1   :  { %1997 = vmatpush1.bf16.msra.mxu0 %v2716_v42  ;;  %v249_v42 = vrot.slane %v240_v38, %v248_v40 }
  0xe2   :  { %1998 = vmatprep.subr.bf16.mxu0 %v2721_v44  ;;  %2038 = vmatpush1.bf16.msra.mxu1 %v2764_v51 }
  0xe3   :  { %2039 = vmatprep.subr.bf16.mxu1 %v2769_v53 }
  0xe5   :  { %1999 = vmatpush1.bf16.msra.mxu0 %v2719_v46 }
  0xe6   :  { %2000 = vmatprep.subr.bf16.mxu0 %v2724_v48  ;;  %2040 = vmatpush1.bf16.msra.mxu1 %v2767_v56 }
  0xe7   :  { %2041 = vmatprep.subr.bf16.mxu1 %v2772_v58 }
  0xe9   :  { %2001 = vmatpush1.bf16.msra.mxu0 %v2722_v50 }
  0xea   :  { %2002 = vmatprep.subr.bf16.mxu0 %v2727_v52  ;;  %2042 = vmatpush1.bf16.msra.mxu1 %v2770_v60 }
  0xeb   :  { %2043 = vmatprep.subr.bf16.mxu1 %v2775_v62 }
  0xed   :  { %2003 = vmatpush2.bf16.msra.mxu0 %v2725_v55 }
  0xee   :  { %2004 = vmatprep.subr.bf16.mxu0 %v2730_v57  ;;  %2044 = vmatpush2.bf16.msra.mxu1 %v2773_v0 }
  0xef   :  { %2045 = vmatprep.subr.bf16.mxu1 %v2778_v2  ;;  %v252_v2 = vsub.s32 2, %v3703_v11 }
  0xf1   :  { %2005 = vmatpush2.bf16.msra.mxu0 %v2728_v59 }
  0xf2   :  { %2006 = vmatprep.subr.bf16.mxu0 %v2733_v61  ;;  %2046 = vmatpush2.bf16.msra.mxu1 %v2776_v5 }
  0xf3   :  { %2047 = vmatprep.subr.bf16.mxu1 %v2781_v7 }
  0xf5   :  { %2007 = vmatpush2.bf16.msra.mxu0 %v2731_v63 }
  0xf6   :  { %2008 = vmatprep.subr.bf16.mxu0 %v2736_v1  ;;  %2048 = vmatpush2.bf16.msra.mxu1 %v2779_v9 }
  0xf7   :  { %2049 = vmatprep.subr.bf16.mxu1 %v2784_v17 }
  0xf9   :  { %2009 = vmatpush2.bf16.msra.mxu0 %v2734_v4  ;;  %v256_v4 = vsub.s32 3, %v3703_v11 }
  0xfa   :  { %2010 = vmatprep.subr.bf16.mxu0 %v2739_v6  ;;  %2050 = vmatpush2.bf16.msra.mxu1 %v2782_v20  ;;  %v253_v6 = vrot.slane %v240_v38, %v252_v2 }
  0xfb   :  { %2051 = vmatprep.subr.bf16.mxu1 %v2787_v26 }
  0xfd   :  { %2011 = vmatpush2.bf16.msra.mxu0 %v2737_v8  ;;  %v257_v8 = vrot.slane %v240_v38, %v256_v4  ;;  %v2074_v38 = vld [vmem:[%s3740_s5] sm:$0x3] }
  0xfe   :  { %2012 = vmatprep.subr.bf16.mxu0 %v2742_v10  ;;  %2052 = vmatpush2.bf16.msra.mxu1 %v2785_v29 }
  0xff   :  { %2053 = vmatprep.subr.bf16.mxu1 %v2790_v32 }
 0x101   :  { %2013 = vmatpush2.bf16.msra.mxu0 %v2740_v13 }
 0x102   :  { %2014 = vmatprep.subr.bf16.mxu0 %v2745_v14  ;;  %2054 = vmatpush2.bf16.msra.mxu1 %v2788_v12 }
 0x103   :  { %2055 = vmatprep.subr.bf16.mxu1 %v2793_v21 }
 0x104   :  { %v1280_v18 = vpop.f32.mrf.mxu0 }
 0x105   :  { %v1321_v19 = vpop.f32.mrf.mxu1  ;;  %2015 = vmatpush2.bf16.msra.mxu0 %v2743_v15  ;;  %v1281_v43 = vadd.f32 %v1280_v18, %v245_v41 }
 0x106   :  { %v1282_v24 = vpop.f32.mrf.mxu0  ;;  %2016 = vmatprep.subr.bf16.mxu0 %v2748_v16  ;;  %2056 = vmatpush2.bf16.msra.mxu1 %v2791_v34 }
 0x107   :  { %v1323_v25 = vpop.f32.mrf.mxu1  ;;  %2057 = vmatprep.subr.bf16.mxu1 %v2796_v35  ;;  %v1283_v44 = vadd.f32 %v1282_v24, %v249_v42  ;;  %v1322_v45 = vadd.f32 %v1321_v19, %v1281_v43  ;;  %v2075_v42 = vunpack.c.l.bf16 %v2074_v38 }
 0x108   :  { %v1284_v27 = vpop.f32.mrf.mxu0 }
 0x109   :  { %v1325_v28 = vpop.f32.mrf.mxu1  ;;  %2017 = vmatpush2.bf16.msra.mxu0 %v2746_v23  ;;  %v1324_v47 = vadd.f32 %v1323_v25, %v1283_v44 }
 0x10a   :  { %v1285_v30 = vpop.f32.mrf.mxu0  ;;  %2058 = vmatpush2.bf16.msra.mxu1 %v2794_v36  ;;  %v1654_v36 = vld [vmem:[%s3739_s4] sm:$0x3]  ;;  %s2824_s4 = smov [#allocation3]  }
 0x10b   :  { %v1326_v31 = vpop.f32.mrf.mxu1  ;;  %v1659_v41 = vrot.slane %v1654_v36, %v3706_v39  ;;  %v1663_v43 = vrot.slane %v1654_v36, %v248_v40  ;;  %s2133_s5 = sshll.u32 %s2824_s4, 4  ;;  %s2134_s5 = int_to_ptr.vmem [resolvable:$true] %s2133_s5 }
 0x10c   :  { %s2801_s20 = scalar_lea.vmem %s2134_s5, 16  ;;  %s2805_s21 = scalar_lea.vmem %s2134_s5, 32 }
 0x10d   :  { %v1403_v3 = vpop.f32.mrf.mxu1  ;;  %p2802_p0 = scmp.ne.s32.totalorder %s2134_s5, %s2801_s20  ;;  %p2806_p1 = scmp.lt.s32.totalorder %s2134_s5, %s2134_s5 }
 0x10e   :  { %p2807_p2 = scmp.lt.s32.totalorder %s2805_s21, %s2801_s20 }
 0x10f   :  { %v1405_v33 = vpop.f32.mrf.mxu1 }
 0x110   :  { %p2808_p3 = por %p2807_p2, %p2806_p1 }
 0x111   :  { %v1407_v22 = vpop.f32.mrf.mxu1 }
 0x112   :  { %p2809_p4 = pnand %p2808_p3, %p2802_p0 }
 0x113   :  { %v1408_v54 = vpop.f32.mrf.mxu1 }
 0x144   :  { %v1362_v46 = vpop.f32.mrf.mxu0 }
 0x145   :  { %v1363_v48 = vadd.f32 %v1362_v46, %v1322_v45  ;;  %v2080_v46 = vrot.slane %v2075_v42, %v3706_v39 }
 0x146   :  { %v1364_v49 = vpop.f32.mrf.mxu0 }
 0x147   :  { %v1404_v50 = vadd.f32 %v1403_v3, %v1363_v48  ;;  %v1365_v51 = vadd.f32 %v1364_v49, %v1324_v47  ;;  %v2084_v47 = vrot.slane %v2075_v42, %v252_v2 }
 0x148   :  { %v1366_v52 = vpop.f32.mrf.mxu0 }
 0x149   :  { %vm1574_vm1 = vcmp.gt.f32.partialorder %v1404_v50, 0.0  ;;  %v1578_v53 = vmul.f32 0.01, %v1404_v50  ;;  %v1406_v55 = vadd.f32 %v1405_v33, %v1365_v51 }
 0x14a   :  { %v1367_v56 = vpop.f32.mrf.mxu0 }
 0x14b   :  { %v1579_v57 = vmul.f32 0.01, %v1406_v55  ;;  %vm1575_vm2 = vcmp.gt.f32.partialorder %v1406_v55, 0.0  ;;  %v1582_v58 = vsel %vm1574_vm1, %v1404_v50, %v1578_v53  ;;  %v2094_v56 = vrot.slane %v2084_v47, %v3706_v39 }
 0x14c   :  { %v1586_v63 = vpack.c.bf16 %v1582_v58, %v1582_v58 }
 0x14d   :  { %v1444_v59 = vpop.f32.mrf.mxu1  ;;  %v1583_v60 = vsel %vm1575_vm2, %v1406_v55, %v1579_v57  ;;  %v2090_v55 = vrot.slane %v2080_v46, %v3706_v39 }
 0x14e   :  { %v1587_v62 = vpack.c.bf16 %v1583_v60, %v1583_v60  ;;  %v1445_v10 = vadd.f32 %v1444_v59, %v253_v6 }
 0x14f   :  { %v1446_v61 = vpop.f32.mrf.mxu1 }
 0x150   :  { %2018 = vmatprep.mubr.bf16.mxu0 %v1587_v62  ;;  %v1447_v14 = vadd.f32 %v1446_v61, %v257_v8  ;;  %v2119_v8 = vand.u32 127, %v242_v37 }
 0x151   :  { %v1448_v0 = vpop.f32.mrf.mxu1  ;;  %2019 = vmatmul.mubr.bf16.vlgmr.msra.gmra.mxu0 %v1586_v63  ;;  %v2100_v63 = vld [vmem:[#allocation2] sm:$0x1] }
 0x153   :  { %v1449_v1 = vpop.f32.mrf.mxu1 }
 0x184   :  { %v1485_v5 = vpop.f32.mrf.mxu0 }
 0x185   :  { %v1486_v15 = vadd.f32 %v1485_v5, %v1445_v10 }
 0x186   :  { %v1487_v7 = vpop.f32.mrf.mxu0 }
 0x187   :  { %v1488_v18 = vadd.f32 %v1487_v7, %v1447_v14 }
 0x188   :  { %v1489_v9 = vpop.f32.mrf.mxu0 }
 0x189   :  { %v2122_v9 = vsub.s32 %v2119_v8, %v3703_v11 }
 0x18a   :  { %v1490_v13 = vpop.f32.mrf.mxu0 }
 0x18c   :  { %v1567_v17 = vpop.f32.mrf.mxu0 }
 0x18d   :  { %v1526_v16 = vpop.f32.mrf.mxu1 }
 0x18e   :  { %v1527_v19 = vadd.f32 %v1526_v16, %v1486_v15  ;;  %v1569_v23 = vpop.f32.mrf.mxu0 }
 0x18f   :  { %v1528_v20 = vpop.f32.mrf.mxu1 }
 0x190   :  { %v1568_v24 = vadd.f32 %v1567_v17, %v1527_v19  ;;  %v1529_v25 = vadd.f32 %v1528_v20, %v1488_v18  ;;  %v1571_v27 = vpop.f32.mrf.mxu0 }
 0x191   :  { %v1530_v26 = vpop.f32.mrf.mxu1 }
 0x192   :  { %vm1576_vm3 = vcmp.gt.f32.partialorder %v1568_v24, 0.0  ;;  %v1580_v28 = vmul.f32 0.01, %v1568_v24  ;;  %v1570_v29 = vadd.f32 %v1569_v23, %v1529_v25  ;;  %v1572_v31 = vpop.f32.mrf.mxu0 }
 0x193   :  { %v1531_v30 = vpop.f32.mrf.mxu1 }
 0x194   :  { %vm1577_vm4 = vcmp.gt.f32.partialorder %v1570_v29, 0.0  ;;  %v1581_v32 = vmul.f32 0.01, %v1570_v29  ;;  %v1584_v3 = vsel %vm1576_vm3, %v1568_v24, %v1580_v28 }
 0x195   :  { %v1588_v21 = vpack.c.bf16 %v1584_v3, %v1584_v3 }
 0x196   :  { %v1585_v12 = vsel %vm1577_vm4, %v1570_v29, %v1581_v32 }
 0x197   :  { %v1589_v33 = vpack.c.bf16 %v1585_v12, %v1585_v12 }
 0x199   :  { %2059 = vmatprep.mubr.bf16.mxu1 %v1589_v33 }
 0x19a   :  { %2060 = vmatmul.mubr.bf16.vlgmr.msra.gmra.mxu1 %v1588_v21 }
 0x211   :  { %v2020_v22 = vpop.f32.mrf.mxu0 }
 0x212   :  { %v2021_v44 = vadd.f32 %v2020_v22, %v1659_v41 }
 0x213   :  { %v2022_v34 = vpop.f32.mrf.mxu0 }
 0x214   :  { %v2023_v48 = vadd.f32 %v2022_v34, %v1663_v43 }
 0x215   :  { %v2024_v54 = vpop.f32.mrf.mxu0 }
 0x217   :  { %v2025_v35 = vpop.f32.mrf.mxu0 }
 0x25a   :  { %v2061_v45 = vpop.f32.mrf.mxu1 }
 0x25b   :  { %v2062_v49 = vadd.f32 %v2061_v45, %v2021_v44 }
 0x25c   :  { %v2063_v50 = vpop.f32.mrf.mxu1 }
 0x25d   :  { %vm2068_vm5 = vcmp.gt.f32.partialorder %v2062_v49, 0.0  ;;  %v2070_v51 = vmul.f32 0.01, %v2062_v49  ;;  %v2064_v52 = vadd.f32 %v2063_v50, %v2023_v48 }
 0x25e   :  { %v2065_v53 = vpop.f32.mrf.mxu1 }
 0x25f   :  { %vm2069_vm6 = vcmp.gt.f32.partialorder %v2064_v52, 0.0  ;;  %v2071_v57 = vmul.f32 0.01, %v2064_v52  ;;  %v2072_v58 = vsel %vm2068_vm5, %v2062_v49, %v2070_v51 }
 0x260   :  { %v2066_v40 = vpop.f32.mrf.mxu1  ;;  %v2095_v60 = vmul.f32 %v2090_v55, %v2072_v58 }
 0x261   :  { %v2073_v59 = vsel %vm2069_vm6, %v2064_v52, %v2071_v57 }
 0x262   :  { %v2096_v61 = vmul.f32 %v2094_v56, %v2073_v59 }
 0x264   :  { %v2097_v62 = vadd.f32 %v2096_v61, %v2095_v60 }
 0x266   :  { %2098 = vadd.xlane.f32.xlu0 %v2097_v62 }
 0x27c   :  { %2103 = vperm.xlu0 %2406, %v2100_v63  }
 0x2ef   :  { %v2099_v0 = vpop.xlane.xlu0 %2098 }
 0x2f7   :  { %v2104_v1 = vpop.permute.xlu0 %2103 }
 0x2f8   :  { %v2109_v2 = vrot.slane %v2104_v1, %v3706_v39 }
 0x2fa   :  { %v2110_v4 = vadd.f32 %v2109_v2, %v2099_v0 }
 0x2fc   :  { %v2403_v5 = vmul.f32 -1.442695, %v2110_v4 }
 0x2fe   :  { %2797 = vpow2.f32 %v2403_v5 }
 0x30b   :  { %v2798_v6 = vpop.eup %2797 }
 0x30c   :  { %v2114_v7 = vadd.f32 1.0, %v2798_v6 }
 0x30e   :  { %2799 = vrcp.f32 %v2114_v7 }
 0x31b   :  { %v2800_v10 = vpop.eup %2799 }
 0x31c   :  { %v2123_v13 = vrot.slane %v2800_v10, %v2122_v9 }
 0x31e   :  { %2126 = vst.msk [vmem:[#allocation3] sm:$0x1] %vm2125_vm7, %v2123_v13 }
 0x31f   :  { %2812 = shalt.err (!%p2809_p4)
}
 0x320   :  { %2136 = dma.vmem_to_hbm [thread:$0]  %s2134_s5, 16, %s3742_s7, [#allocation4]  }
 0x321   :  { %2821 = dma.done.wait [#allocation4], 16  }
 0x322   :  { %2822 = vsyncadd [#allocation4], 4294967280 }
 0x323   :  { %2140 = vsyncpa [#allocation4], 1 }

</bundles_post_ra>
